<compile_context>
chip_gen: v5e
topology: v5e:2x2
jax: 0.10.0
libtpu: 0.0.40
codegen_flags: <defaults>
</compile_context>

<pallas_src>
import jax
import jax.numpy as jnp
from jax.experimental import pallas as pl
from jax.experimental.pallas import tpu as pltpu

_SUBLANE = 8
_LANE = 128


def _round_up(x, m):
    return ((x + m - 1) // m) * m


def _default_matmul_dtype():
    """bf16 matmul inputs on v6e/v7x; conservative f32 weights on older chips."""
    try:
        kind = jax.devices()[0].device_kind.lower()
    except Exception:
        return jnp.bfloat16
    if any(tag in kind for tag in ("v2", "v3", "v4", "v5")):
        return jnp.float32
    return jnp.bfloat16


def _film_gen_kernel(text_ref, w1_ref, b1_ref, w2_ref, b2_ref, out_ref):
    # hidden = relu(text @ W1 + b1): MXU matmul accumulates in f32,
    # bias-add / relu stay in f32 (v5e-safe epilogue).
    h = jnp.dot(text_ref[...], w1_ref[...], preferred_element_type=jnp.float32)
    h = jnp.maximum(h + b1_ref[...], 0.0)
    # gammas_betas = hidden @ W2 + b2 (second matmul in the weights' dtype).
    gb = jnp.dot(h.astype(w2_ref.dtype), w2_ref[...],
                 preferred_element_type=jnp.float32)
    out_ref[...] = (gb + b2_ref[...]).astype(out_ref.dtype)


def film_gen_forward_pallas(text, w1_p, b1_p, w2_p, b2_p, n_out):
    """relu(text @ w1 + b1) @ w2 + b2 in a single grid-less Pallas kernel.

    text:  [B, text_size]   (unpadded, float32)
    w1_p:  [K_pad, H_pad]   (zero-padded, matmul dtype)
    b1_p:  [1, H_pad]       (zero-padded, float32)
    w2_p:  [H_pad, N_pad]   (zero-padded, matmul dtype)
    b2_p:  [1, N_pad]       (zero-padded, float32)
    returns: [B, n_out] float32
    """
    B, text_size = text.shape
    K_pad, H_pad = w1_p.shape
    _, N_pad = w2_p.shape
    B_pad = _round_up(B, _SUBLANE)

    # Zero-pad batch (sublane multiple) and text features (lane multiple) so the
    # kernel works on full (8,128) tiles and the output store is unmasked.
    text_p = (jnp.zeros((B_pad, K_pad), w1_p.dtype)
              .at[:B, :text_size].set(text.astype(w1_p.dtype)))

    f32_bytes = jnp.dtype(jnp.float32).itemsize
    flops = 2 * B_pad * (K_pad * H_pad + H_pad * N_pad)
    bytes_accessed = (text_p.size * text_p.dtype.itemsize
                      + w1_p.size * w1_p.dtype.itemsize
                      + b1_p.size * b1_p.dtype.itemsize
                      + w2_p.size * w2_p.dtype.itemsize
                      + b2_p.size * b2_p.dtype.itemsize
                      + B_pad * N_pad * f32_bytes)

    vmem = pltpu.MemorySpace.VMEM
    out_p = pl.pallas_call(
        _film_gen_kernel,
        out_shape=jax.ShapeDtypeStruct((B_pad, N_pad), jnp.float32),
        in_specs=[
            pl.BlockSpec(text_p.shape, lambda: (0, 0), memory_space=vmem),
            pl.BlockSpec(w1_p.shape, lambda: (0, 0), memory_space=vmem),
            pl.BlockSpec(b1_p.shape, lambda: (0, 0), memory_space=vmem),
            pl.BlockSpec(w2_p.shape, lambda: (0, 0), memory_space=vmem),
            pl.BlockSpec(b2_p.shape, lambda: (0, 0), memory_space=vmem),
        ],
        out_specs=pl.BlockSpec((B_pad, N_pad), lambda: (0, 0),
                               memory_space=vmem),
        cost_estimate=pl.CostEstimate(flops=flops, transcendentals=0,
                                      bytes_accessed=bytes_accessed),
    )(text_p, w1_p, b1_p, w2_p, b2_p)
    # Drop batch / lane padding outside the kernel.
    return out_p[:B, :n_out]


class SimpleTextFilmGenPallas:
    """JAX/Pallas port of SimpleTextFilmGen (stateful per-layer slicing in Python)."""

    def __init__(self, config, n_block_to_modulate, n_feature_map_per_block,
                 text_size, vision_size=None, *, key=None, matmul_dtype=None):
        self.n_block_to_modulate = n_block_to_modulate
        self.film_gen_hidden_size = config["film_gen_hidden_size"]
        self.text_size = text_size
        self.n_feature_map_per_block = n_feature_map_per_block
        self.n_features_to_modulate = n_block_to_modulate * n_feature_map_per_block
        self.n_out = n_feature_map_per_block * n_block_to_modulate * 2
        self.matmul_dtype = (matmul_dtype if matmul_dtype is not None
                             else _default_matmul_dtype())

        if key is None:
            key = jax.random.PRNGKey(0)
        k1, k2, k3, k4 = jax.random.split(key, 4)
        # nn.Linear-style U(-1/sqrt(fan_in), +1/sqrt(fan_in)) init, stored
        # already transposed to [in, out] so the kernel does x @ W + b.
        lim1 = 1.0 / (self.text_size ** 0.5)
        lim2 = 1.0 / (self.film_gen_hidden_size ** 0.5)
        self.w1 = jax.random.uniform(k1, (self.text_size, self.film_gen_hidden_size),
                                     jnp.float32, -lim1, lim1)
        self.b1 = jax.random.uniform(k2, (self.film_gen_hidden_size,),
                                     jnp.float32, -lim1, lim1)
        self.w2 = jax.random.uniform(k3, (self.film_gen_hidden_size, self.n_out),
                                     jnp.float32, -lim2, lim2)
        self.b2 = jax.random.uniform(k4, (self.n_out,), jnp.float32, -lim2, lim2)

        # Zero-pad contraction / output dims once at init (exact, see header).
        k_pad = _round_up(self.text_size, _LANE)
        h_pad = _round_up(self.film_gen_hidden_size, _LANE)
        n_pad = _round_up(self.n_out, _LANE)
        self._w1_p = (jnp.zeros((k_pad, h_pad), jnp.float32)
                      .at[:self.text_size, :self.film_gen_hidden_size]
                      .set(self.w1).astype(self.matmul_dtype))
        self._b1_p = (jnp.zeros((1, h_pad), jnp.float32)
                      .at[0, :self.film_gen_hidden_size].set(self.b1))
        self._w2_p = (jnp.zeros((h_pad, n_pad), jnp.float32)
                      .at[:self.film_gen_hidden_size, :self.n_out]
                      .set(self.w2).astype(self.matmul_dtype))
        self._b2_p = (jnp.zeros((1, n_pad), jnp.float32)
                      .at[0, :self.n_out].set(self.b2))

        self.num_layer_count = 0
        self.gammas_betas = None
        self._per_block = None

    def forward(self, text, first_layer, vision=None):
        if first_layer:
            self.num_layer_count = 0
            gb = film_gen_forward_pallas(text, self._w1_p, self._b1_p,
                                         self._w2_p, self._b2_p, self.n_out)
            self.gammas_betas = gb
            # Split into per-block gamma/beta slices ONCE; later forward()
            # calls are pure Python indexing (no per-layer slice dispatch).
            b = gb.shape[0]
            gb3 = gb.reshape(b, self.n_block_to_modulate,
                             2 * self.n_feature_map_per_block)
            self._per_block = tuple(gb3[:, i, :]
                                    for i in range(self.n_block_to_modulate))
        if self._per_block is None:
            raise RuntimeError("forward(first_layer=True) must be called first")
        if self.num_layer_count >= self.n_block_to_modulate:
            raise IndexError("more forward() calls than n_block_to_modulate")
        out = self._per_block[self.num_layer_count]
        self.num_layer_count += 1
        return out


def _reference_forward(text, w1, b1, w2, b2):
    h = jnp.maximum(text @ w1 + b1, 0.0)
    return h @ w2 + b2


if __name__ == "__main__":
    # Small shapes consistent with the module.
    batch = 2
    text_size = 32
    config = {"film_gen_hidden_size": 32}
    n_block_to_modulate = 4
    n_feature_map_per_block = 16   # -> n_out = 4 * 16 * 2 = 128 (lane-dense)

    key = jax.random.PRNGKey(0)
    k_text, k_params = jax.random.split(key)
    text = jax.random.normal(k_text, (batch, text_size), jnp.float32)

    gen = SimpleTextFilmGenPallas(config, n_block_to_modulate,
                                  n_feature_map_per_block, text_size,
                                  key=k_params)

    # First call runs the Pallas MLP kernel and caches the per-block slices.
    out0 = gen.forward(text, first_layer=True)
    jax.block_until_ready(out0)
    # Subsequent calls are pure Python indexing into cached slices.
    outs = [out0] + [gen.forward(text, first_layer=False)
                     for _ in range(n_block_to_modulate - 1)]

    got_full = jnp.concatenate(outs, axis=1)
    ref_full = _reference_forward(text, gen.w1, gen.b1, gen.w2, gen.b2)

    assert out0.shape == (batch, n_feature_map_per_block * 2)
    assert got_full.shape == (batch, n_feature_map_per_block * n_block_to_modulate * 2)

    # Tight tolerance for f32 matmuls, loose when weights are cast to bf16.
    if gen.matmul_dtype == jnp.bfloat16:
        atol, rtol = 2e-2, 2e-2
    else:
        atol, rtol = 1e-5, 1e-5
    max_err = float(jnp.max(jnp.abs(got_full - ref_full)))
    assert jnp.allclose(got_full, ref_full, atol=atol, rtol=rtol), max_err

    print("KERNEL_OK")
</pallas_src>

<mosaic_0001>
module attributes {stable_mosaic.version = 11 : i64} {
  func.func @_film_gen_kernel(%arg0: memref<8x128xbf16, #tpu.memory_space<vmem>>, %arg1: memref<128x128xbf16, #tpu.memory_space<vmem>>, %arg2: memref<1x128xf32, #tpu.memory_space<vmem>>, %arg3: memref<128x128xbf16, #tpu.memory_space<vmem>>, %arg4: memref<1x128xf32, #tpu.memory_space<vmem>>, %arg5: memref<8x128xf32, #tpu.memory_space<vmem>>) attributes {dimension_semantics = [], scalar_prefetch = 0 : i64, scratch_operands = 0 : i64, tpu.core_type = #tpu.core_type<tc>} {
    %c0 = arith.constant 0 : index
    %c0_0 = arith.constant 0 : index
    %0 = vector.load %arg0[%c0, %c0_0] : memref<8x128xbf16, #tpu.memory_space<vmem>>, vector<8x128xbf16>
    %c0_1 = arith.constant 0 : index
    %c0_2 = arith.constant 0 : index
    %1 = vector.load %arg1[%c0_1, %c0_2] : memref<128x128xbf16, #tpu.memory_space<vmem>>, vector<128x128xbf16>
    %cst = arith.constant dense<0.000000e+00> : vector<8x128xf32>
    %2 = tpu.matmul %0, %1, %cst {dimension_numbers = #tpu.dot_dimension_numbers<[1], [0], [0], [1], [0, 0, 1, 1], [], []>} : vector<8x128xbf16>, vector<128x128xbf16>, vector<8x128xf32> -> vector<8x128xf32>
    %c0_3 = arith.constant 0 : index
    %c0_4 = arith.constant 0 : index
    %3 = vector.load %arg2[%c0_3, %c0_4] : memref<1x128xf32, #tpu.memory_space<vmem>>, vector<1x128xf32>
    %4 = vector.broadcast %3 : vector<1x128xf32> to vector<8x128xf32>
    %5 = arith.addf %2, %4 : vector<8x128xf32>
    %cst_5 = arith.constant 0.000000e+00 : f32
    %6 = vector.broadcast %cst_5 : f32 to vector<8x128xf32>
    %7 = arith.maximumf %5, %6 : vector<8x128xf32>
    %8 = arith.truncf %7 : vector<8x128xf32> to vector<8x128xbf16>
    %c0_6 = arith.constant 0 : index
    %c0_7 = arith.constant 0 : index
    %9 = vector.load %arg3[%c0_6, %c0_7] : memref<128x128xbf16, #tpu.memory_space<vmem>>, vector<128x128xbf16>
    %cst_8 = arith.constant dense<0.000000e+00> : vector<8x128xf32>
    %10 = tpu.matmul %8, %9, %cst_8 {dimension_numbers = #tpu.dot_dimension_numbers<[1], [0], [0], [1], [0, 0, 1, 1], [], []>} : vector<8x128xbf16>, vector<128x128xbf16>, vector<8x128xf32> -> vector<8x128xf32>
    %c0_9 = arith.constant 0 : index
    %c0_10 = arith.constant 0 : index
    %11 = vector.load %arg4[%c0_9, %c0_10] : memref<1x128xf32, #tpu.memory_space<vmem>>, vector<1x128xf32>
    %12 = vector.broadcast %11 : vector<1x128xf32> to vector<8x128xf32>
    %13 = arith.addf %10, %12 : vector<8x128xf32>
    %c0_11 = arith.constant 0 : index
    %c0_12 = arith.constant 0 : index
    %14 = vector.load %arg5[%c0_11, %c0_12] : memref<8x128xf32, #tpu.memory_space<vmem>>, vector<8x128xf32>
    tpu.vector_store %arg5[%c0_11, %c0_12], %13 {strides = array<i32>} : memref<8x128xf32, #tpu.memory_space<vmem>>, vector<8x128xf32>,
    return
  }
}

</mosaic_0001>

<bundles_post_ra>
// kernel: tpu_custom_call.1
= control target key start
LH: loop header
LB: loop body
LE: loop exit
PB: predicated region body
PF: predicated region fallthrough
CT: control target
= control target key end

     0   :  { %10 = vsyncpa [#allocation3], 0  ;;  %s494_s0 = inlined_call_operand.hbm [shape: bf16[8,128], index: 0, kind: input, shape index: {}]   ;;  %s495_s1 = inlined_call_operand.hbm [shape: bf16[128,128], index: 1, kind: input, shape index: {}]   ;;  %s496_s2 = inlined_call_operand.vmem [shape: f32[1,128], index: 2, kind: input, shape index: {}]   ;;  %s497_s3 = inlined_call_operand.hbm [shape: bf16[128,128], index: 3, kind: input, shape index: {}]   ;;  %s498_s4 = inlined_call_operand.vmem [shape: f32[1,128], index: 4, kind: input, shape index: {}]   ;;  %s499_s5 = inlined_call_operand.hbm [shape: f32[8,128], index: 5, kind: output, shape index: {}]  }
   0x1   :  { %11 = vsyncpa [#allocation6], 0  ;;  %s28_s20 = sshll.u32 %s495_s1, 4  ;;  %s29_s20 = int_to_ptr.hbm [resolvable:$true] %s28_s20 }
   0x2   :  { %12 = vsyncpa [#allocation4], 0  ;;  %s440_s21 = smov [#allocation5]   ;;  %s18_s25 = sshll.u32 %s494_s0, 4  ;;  %s19_s25 = int_to_ptr.hbm [resolvable:$true] %s18_s25 }
   0x3   :  { %s30_s22 = sshll.u32 %s440_s21, 4  ;;  %s441_s26 = smov 64   ;;  %s31_s22 = int_to_ptr.vmem [resolvable:$true] %s30_s22 }
   0x4   :  { %s442_s27 = smov 4   ;;  %s443_s28 = smov [#allocation2]  }
   0x5   :  { %36 = dma.hbm_to_vmem [thread:$0]  %s29_s20, 1024, %s31_s22, [#allocation6], %s441_s26, %s441_s26, %s442_s27  }
   0x6   :  { %s20_s29 = sshll.u32 %s443_s28, 4  ;;  %s43_s7 = sshll.u32 %s497_s3, 4  ;;  %s21_s29 = int_to_ptr.vmem [resolvable:$true] %s20_s29  ;;  %s44_s7 = int_to_ptr.hbm [resolvable:$true] %s43_s7 }
   0x7   :  { %23 = dma.hbm_to_vmem [thread:$0]  %s19_s25, 64, %s21_s29, [#allocation3]  }
   0x8   :  { %s444_s1 = smov [#allocation7]  }
   0x9   :  { %s45_s8 = sshll.u32 %s444_s1, 4  ;;  %s46_s8 = int_to_ptr.vmem [resolvable:$true] %s45_s8 }
   0xa   :  { %51 = dma.hbm_to_vmem [thread:$0]  %s44_s7, 1024, %s46_s8, [#allocation6], %s441_s26, %s441_s26, %s442_s27  }
   0xb   :  { %434 = dma.done.wait [#allocation3], 64  }
   0xc   :  { %435 = vsyncadd [#allocation3], 4294967232 }
   0xd   :  { %436 = dma.done.wait [#allocation6], 2048  }
   0xe   :  { %437 = vsyncadd [#allocation6], 4294965248  ;;  %v321_v0 = vld [vmem:[#allocation5 + $0x38] sm:$0xff]  ;;  %v320_v1 = vld [vmem:[#allocation5 + $0x30] sm:$0xff]  ;;  %s445_s11 = smov [#allocation8]   ;;  %s239_s15 = sshll.u32 %s499_s5, 4  ;;  %s240_s15 = int_to_ptr.hbm [resolvable:$true] %s239_s15 }
   0xf   :  { %135 = vmatpush.bf16.msra.mxu0 %v321_v0  ;;  %v329_v2 = vld [vmem:[#allocation7 + $0x38] sm:$0xff]  ;;  %v328_v3 = vld [vmem:[#allocation7 + $0x30] sm:$0xff]  ;;  %v319_v4 = vld [vmem:[#allocation5 + $0x28] sm:$0xff]  ;;  %s237_s12 = sshll.u32 %s445_s11, 4  ;;  %s238_s12 = int_to_ptr.vmem [resolvable:$true] %s237_s12 }
  0x10   :  { %218 = vmatpush.bf16.msra.mxu1 %v329_v2  ;;  %v327_v5 = vld [vmem:[#allocation7 + $0x28] sm:$0xff]  ;;  %v318_v6 = vld [vmem:[#allocation5 + $0x20] sm:$0xff]  ;;  %v317_v8 = vld [vmem:[#allocation5 + $0x18] sm:$0xff] }
  0x11   :  { %v326_v7 = vld [vmem:[#allocation7 + $0x20] sm:$0xff]  ;;  %v325_v9 = vld [vmem:[#allocation7 + $0x18] sm:$0xff]  ;;  %v316_v10 = vld [vmem:[#allocation5 + $0x10] sm:$0xff] }
  0x12   :  { %v324_v11 = vld [vmem:[#allocation7 + $0x10] sm:$0xff]  ;;  %v315_v12 = vld [vmem:[#allocation5 + $0x8] sm:$0xff]  ;;  %v314_v13 = vld [vmem:[#allocation5] sm:$0xff] }
  0x13   :  { %136 = vmatpush.bf16.msra.mxu0 %v320_v1  ;;  %v66_v14 = vld [vmem:[#allocation2] sm:$0xf]  ;;  %v323_v15 = vld [vmem:[#allocation7 + $0x8] sm:$0xff]  ;;  %v322_v16 = vld [vmem:[#allocation7] sm:$0xff] }
  0x14   :  { %219 = vmatpush.bf16.msra.mxu1 %v328_v3  ;;  %v336_v17 = vld [vmem:[%s496_s2] ss:$0 sm:$0xff] }
  0x15   :  { %v337_v23 = vld [vmem:[%s498_s4] ss:$0 sm:$0xff] }
  0x17   :  { %137 = vmatpush.bf16.msra.mxu0 %v319_v4 }
  0x18   :  { %220 = vmatpush.bf16.msra.mxu1 %v327_v5 }
  0x1b   :  { %138 = vmatpush.bf16.msra.mxu0 %v318_v6 }
  0x1c   :  { %221 = vmatpush.bf16.msra.mxu1 %v326_v7 }
  0x1f   :  { %139 = vmatpush.bf16.msra.mxu0 %v317_v8 }
  0x20   :  { %222 = vmatpush.bf16.msra.mxu1 %v325_v9 }
  0x23   :  { %140 = vmatpush.bf16.msra.mxu0 %v316_v10 }
  0x24   :  { %223 = vmatpush.bf16.msra.mxu1 %v324_v11 }
  0x27   :  { %141 = vmatpush.bf16.msra.mxu0 %v315_v12 }
  0x28   :  { %224 = vmatpush.bf16.msra.mxu1 %v323_v15 }
  0x2b   :  { %142 = vmatpush.bf16.msra.mxu0 %v314_v13 }
  0x2c   :  { %225 = vmatpush.bf16.msra.mxu1 %v322_v16 }
  0x2e   :  { %143 = vmatmul.bf16.vlgmr.msra.gmra.mxu0 %v66_v14 }
  0xab   :  { %v144_v18 = vpop.f32.mrf.mxu0 }
  0xac   :  { %v145_v19 = vadd.f32 %v336_v17, %v144_v18 }
  0xae   :  { %v148_v20 = vmax.f32 %v145_v19, 0.0 }
  0xb0   :  { %v149_v21 = vpack.c.bf16 %v148_v20, %v148_v20 }
  0xb2   :  { %226 = vmatmul.bf16.vlgmr.msra.gmra.mxu1 %v149_v21 }
  0xb3   :  { %v146_v22 = vpop.f32.mrf.mxu0 }
 0x12f   :  { %v227_v24 = vpop.f32.mrf.mxu1 }
 0x130   :  { %v228_v25 = vadd.f32 %v337_v23, %v227_v24 }
 0x132   :  { %231 = vst [vmem:[#allocation8] sm:$0xff] %v228_v25 }
 0x133   :  { %242 = dma.vmem_to_hbm [thread:$0]  %s238_s12, 128, %s240_s15, [#allocation4]  }
 0x137   :  { %v229_v26 = vpop.f32.mrf.mxu1 }
 0x138   :  { %438 = dma.done.wait [#allocation4], 128  }
 0x139   :  { %439 = vsyncadd [#allocation4], 4294967168 }
 0x13a   :  { %247 = vsyncpa [#allocation3], 1 }
 0x13b   :  { %248 = vsyncpa [#allocation6], 1 }
 0x13c   :  { %249 = vsyncpa [#allocation4], 1 }

</bundles_post_ra>
